<compile_context>
chip_gen: v7x
topology: tpu7x:2x2x1
jax: 0.10.0
libtpu: 0.0.40
codegen_flags: <defaults>
</compile_context>

<pallas_src>
import functools

import jax
import jax.numpy as jnp
import numpy as np
from jax.experimental import pallas as pl
from jax.experimental.pallas import tpu as pltpu


def _round_up(x, m):
    return ((x + m - 1) // m) * m


def _vmem_capacity_bytes():
    """Generation-aware VMEM capacity (64 MiB/TC on v7x, 128 MiB on v5e/v6e)."""
    try:
        return int(pltpu.get_tpu_info().vmem_capacity_bytes)
    except Exception:
        return 64 * 1024 * 1024  # conservative fallback (v7x per-core VMEM)


def _cskd_loss_kernel(ys_ref, yt_ref, tgt_ref, out_ref, *,
                      inv_t: float, c_t: float, c_s: float, cm1: float,
                      batch_size: int, tile_b: int):
    TB, C = ys_ref.shape

    # one-hot(target) via broadcasted-iota compare (the scatter_ equivalent).
    cols = jax.lax.broadcasted_iota(jnp.int32, (TB, C), 1)
    mask = cols == tgt_ref[...]                                   # (TB, C) bool

    # Only the target column survives the masking, so a single select + lane
    # reduction per input extracts y[row, target[row]] exactly (all other
    # addends are 0).  Runs in the input dtype (bf16-friendly); upcast after.
    yt_tgt = jnp.sum(jnp.where(mask, yt_ref[...], 0), axis=1,
                     keepdims=True).astype(jnp.float32)           # (TB, 1)
    ys_tgt = jnp.sum(jnp.where(mask, ys_ref[...], 0), axis=1,
                     keepdims=True).astype(jnp.float32)           # (TB, 1)

    # a = (y_t[tgt] - delta)/T ;  b = (y_s[tgt] - delta - lambda)/T
    a = yt_tgt * inv_t - c_t
    b = ys_tgt * inv_t - c_s

    # Row of zt is [0, .., a, .., 0]; logsumexp = log(exp(a) + (C-1)), stable.
    m_t = jnp.maximum(a, 0.0)
    l_t = m_t + jnp.log(jnp.exp(a - m_t) + cm1 * jnp.exp(-m_t))
    m_s = jnp.maximum(b, 0.0)
    l_s = m_s + jnp.log(jnp.exp(b - m_s) + cm1 * jnp.exp(-m_s))

    # Closed-form KL(p_t || p_s) per row (derivation in module docstring).
    row = jnp.exp(a - l_t) * (a - b) + (l_s - l_t)                # (TB, 1)

    # Mask padded rows of the (possibly ragged) last tile BEFORE reducing so
    # any inf/NaN produced from garbage rows is discarded by the select.
    row_ids = (pl.program_id(0) * tile_b
               + jax.lax.broadcasted_iota(jnp.int32, (TB, 1), 0))
    row = jnp.where(row_ids < batch_size, row, 0.0)

    # Lane-dense per-block partial: broadcast the block sum across 128 lanes
    # (unmasked vst); the wrapper reads lane 0 of each block and reduces.
    partial = jnp.sum(row)
    out_ref[...] = jnp.zeros((1, 128), jnp.float32) + partial


def cskd_loss(y_s, y_t, delta, lambda_, target, temperature=4.0, *,
              block_b=None):
    """Pallas implementation of CSKDLoss.forward (alpha/beta/epoch unused)."""
    B, C = y_s.shape
    tgt = jnp.asarray(target, jnp.int32).reshape(B, 1)

    delta = float(delta)           # module only ever uses python scalars
    lambda_ = float(lambda_)
    temperature = float(temperature)
    inv_t = 1.0 / temperature

    # Tile sizing: biggest batch tile that keeps
    #   2 logit inputs x 2 pipeline buffers + ~4 live (TB, C)-wide temporaries
    # under a generation-aware VMEM budget, rounded to 8 sublanes.
    itemsize = max(jnp.dtype(y_s.dtype).itemsize, jnp.dtype(y_t.dtype).itemsize)
    vmem_cap = _vmem_capacity_bytes()
    vmem_limit = (vmem_cap * 3) // 4          # 48 MiB on v7x, 96 MiB on v5e/v6e
    tile_budget = (vmem_cap * 2) // 5         # ~25 MiB v7x, ~51 MiB v5e/v6e

    if block_b is None:
        per_row_bytes = C * (2 * 2 * itemsize + 4 * 4)
        tb = tile_budget // per_row_bytes
        tb = int(max(8, min(4096, (tb // 8) * 8)))
    else:
        tb = int(block_b)
    tb = min(tb, _round_up(B, 8))
    num_blocks = pl.cdiv(B, tb)

    kernel = functools.partial(
        _cskd_loss_kernel,
        inv_t=inv_t,
        c_t=delta * inv_t,                 # delta / T
        c_s=(delta + lambda_) * inv_t,     # (delta + lambda) / T
        cm1=float(C - 1),
        batch_size=B,
        tile_b=tb,
    )

    partials = pl.pallas_call(
        kernel,
        out_shape=jax.ShapeDtypeStruct((1, 128 * num_blocks), jnp.float32),
        grid=(num_blocks,),
        in_specs=[
            pl.BlockSpec((tb, C), lambda i: (i, 0)),   # y_s tile
            pl.BlockSpec((tb, C), lambda i: (i, 0)),   # y_t tile
            pl.BlockSpec((tb, 1), lambda i: (i, 0)),   # target tile (int32)
        ],
        out_specs=pl.BlockSpec((1, 128), lambda i: (0, i)),
        compiler_params=pltpu.CompilerParams(
            dimension_semantics=("parallel",),         # independent blocks
            vmem_limit_bytes=int(vmem_limit),
        ),
    )(y_s, y_t, tgt)

    block_sums = partials.reshape(num_blocks, 128)[:, 0]
    return jnp.sum(block_sums) * (temperature ** 2 / B)   # batchmean * T^2


def _reference(y_s, y_t, delta, lambda_, target, temperature):
    """Pure-JAX reference mirroring the PyTorch module (for verification)."""
    B, C = y_s.shape
    mask = jax.nn.one_hot(target, C, dtype=jnp.float32)
    y_t_delta = delta * mask
    y_t2 = y_t.astype(jnp.float32) * mask - y_t_delta
    y_s2 = y_s.astype(jnp.float32) * mask - y_t_delta - lambda_ * mask
    log_p_s = jax.nn.log_softmax(y_s2 / temperature, axis=1)
    p_t = jax.nn.softmax(y_t2 / temperature, axis=1)
    kl = jnp.where(p_t > 0, p_t * (jnp.log(p_t) - log_p_s), 0.0)
    return jnp.sum(kl) / B * temperature ** 2


if __name__ == "__main__":
    # CSKDLoss(alpha=1, beta=8, temperature=4); alpha/beta don't affect forward.
    temperature = 4.0
    delta = 0.5
    lambda_ = 0.25

    key = jax.random.PRNGKey(0)
    k1, k2, k3, k4, k5, k6 = jax.random.split(key, 6)

    # Case 1: small single-tile launch, f32 logits.
    B, C = 8, 128
    y_s = jax.random.normal(k1, (B, C), dtype=jnp.float32)
    y_t = jax.random.normal(k2, (B, C), dtype=jnp.float32)
    target = jax.random.randint(k3, (B,), 0, C, dtype=jnp.int32)

    loss = jax.block_until_ready(
        cskd_loss(y_s, y_t, delta, lambda_, target, temperature))
    ref = _reference(y_s, y_t, delta, lambda_, target, temperature)
    np.testing.assert_allclose(np.asarray(loss), np.asarray(ref),
                               rtol=1e-3, atol=1e-5)

    # Case 2: multi-block "parallel" grid with a ragged last tile
    # (B=20, TB=8 -> 3 blocks, 4 padded rows masked in-kernel), bf16 logits.
    B2, C2 = 20, 128
    y_s2 = jax.random.normal(k4, (B2, C2), dtype=jnp.float32).astype(jnp.bfloat16)
    y_t2 = jax.random.normal(k5, (B2, C2), dtype=jnp.float32).astype(jnp.bfloat16)
    target2 = jax.random.randint(k6, (B2,), 0, C2, dtype=jnp.int32)

    loss2 = jax.block_until_ready(
        cskd_loss(y_s2, y_t2, delta, lambda_, target2, temperature, block_b=8))
    ref2 = _reference(y_s2, y_t2, delta, lambda_, target2, temperature)
    np.testing.assert_allclose(np.asarray(loss2), np.asarray(ref2),
                               rtol=1e-3, atol=1e-5)

    print("KERNEL_OK")
</pallas_src>

<mosaic_0001>
module attributes {stable_mosaic.version = 11 : i64} {
  func.func @_cskd_loss_kernel(%arg0: i32, %arg1: memref<8x128xf32, #tpu.memory_space<vmem>>, %arg2: memref<8x128xf32, #tpu.memory_space<vmem>>, %arg3: memref<8x1xi32, #tpu.memory_space<vmem>>, %arg4: memref<1x128xf32, #tpu.memory_space<vmem>>) attributes {dimension_semantics = [#tpu.dimension_semantics<parallel>], iteration_bounds = array<i64: 1>, scalar_prefetch = 0 : i64, scratch_operands = 0 : i64, tpu.core_type = #tpu.core_type<tc>, window_params = [{transform_indices = @transform_0, window_bounds = array<i64: 8, 128>}, {transform_indices = @transform_1, window_bounds = array<i64: 8, 128>}, {transform_indices = @transform_2, window_bounds = array<i64: 8, 1>}, {transform_indices = @transform_3, window_bounds = array<i64: 1, 128>}]} {
    %0 = tpu.iota {dimensions = array<i32: 1>} : vector<8x128xi32>
    %c0 = arith.constant 0 : index
    %c0_0 = arith.constant 0 : index
    %1 = vector.load %arg3[%c0, %c0_0] : memref<8x1xi32, #tpu.memory_space<vmem>>, vector<8x1xi32>
    %2 = vector.broadcast %1 : vector<8x1xi32> to vector<8x128xi32>
    %3 = arith.cmpi eq, %0, %2 : vector<8x128xi32>
    %c0_1 = arith.constant 0 : index
    %c0_2 = arith.constant 0 : index
    %4 = vector.load %arg2[%c0_1, %c0_2] : memref<8x128xf32, #tpu.memory_space<vmem>>, vector<8x128xf32>
    %c0_i32 = arith.constant 0 : i32
    %5 = arith.sitofp %c0_i32 : i32 to f32
    %6 = vector.broadcast %5 : f32 to vector<8x128xf32>
    %7 = arith.select %3, %4, %6 : vector<8x128xi1>, vector<8x128xf32>
    %cst = arith.constant dense<0.000000e+00> : vector<8xf32>
    %8 = vector.multi_reduction <add>, %7, %cst [1] : vector<8x128xf32> to vector<8xf32>
    %9 = vector.shape_cast %8 : vector<8xf32> to vector<8x1xf32>
    %c0_3 = arith.constant 0 : index
    %c0_4 = arith.constant 0 : index
    %10 = vector.load %arg1[%c0_3, %c0_4] : memref<8x128xf32, #tpu.memory_space<vmem>>, vector<8x128xf32>
    %c0_i32_5 = arith.constant 0 : i32
    %11 = arith.sitofp %c0_i32_5 : i32 to f32
    %12 = vector.broadcast %11 : f32 to vector<8x128xf32>
    %13 = arith.select %3, %10, %12 : vector<8x128xi1>, vector<8x128xf32>
    %cst_6 = arith.constant dense<0.000000e+00> : vector<8xf32>
    %14 = vector.multi_reduction <add>, %13, %cst_6 [1] : vector<8x128xf32> to vector<8xf32>
    %15 = vector.shape_cast %14 : vector<8xf32> to vector<8x1xf32>
    %cst_7 = arith.constant 2.500000e-01 : f32
    %16 = vector.broadcast %cst_7 : f32 to vector<8x1xf32>
    %17 = arith.mulf %9, %16 : vector<8x1xf32>
    %cst_8 = arith.constant 1.250000e-01 : f32
    %18 = vector.broadcast %cst_8 : f32 to vector<8x1xf32>
    %19 = arith.subf %17, %18 : vector<8x1xf32>
    %cst_9 = arith.constant 2.500000e-01 : f32
    %20 = vector.broadcast %cst_9 : f32 to vector<8x1xf32>
    %21 = arith.mulf %15, %20 : vector<8x1xf32>
    %cst_10 = arith.constant 1.875000e-01 : f32
    %22 = vector.broadcast %cst_10 : f32 to vector<8x1xf32>
    %23 = arith.subf %21, %22 : vector<8x1xf32>
    %cst_11 = arith.constant 0.000000e+00 : f32
    %24 = vector.broadcast %cst_11 : f32 to vector<8x1xf32>
    %25 = arith.maximumf %19, %24 : vector<8x1xf32>
    %26 = arith.subf %19, %25 : vector<8x1xf32>
    %27 = math.exp %26 : vector<8x1xf32>
    %cst_12 = arith.constant 0.000000e+00 : f32
    %28 = vector.broadcast %cst_12 : f32 to vector<8x1xf32>
    %29 = arith.subf %28, %25 : vector<8x1xf32>
    %30 = math.exp %29 : vector<8x1xf32>
    %cst_13 = arith.constant 1.270000e+02 : f32
    %31 = vector.broadcast %cst_13 : f32 to vector<8x1xf32>
    %32 = arith.mulf %31, %30 : vector<8x1xf32>
    %33 = arith.addf %27, %32 : vector<8x1xf32>
    %34 = math.log %33 : vector<8x1xf32>
    %35 = arith.addf %25, %34 : vector<8x1xf32>
    %cst_14 = arith.constant 0.000000e+00 : f32
    %36 = vector.broadcast %cst_14 : f32 to vector<8x1xf32>
    %37 = arith.maximumf %23, %36 : vector<8x1xf32>
    %38 = arith.subf %23, %37 : vector<8x1xf32>
    %39 = math.exp %38 : vector<8x1xf32>
    %cst_15 = arith.constant 0.000000e+00 : f32
    %40 = vector.broadcast %cst_15 : f32 to vector<8x1xf32>
    %41 = arith.subf %40, %37 : vector<8x1xf32>
    %42 = math.exp %41 : vector<8x1xf32>
    %cst_16 = arith.constant 1.270000e+02 : f32
    %43 = vector.broadcast %cst_16 : f32 to vector<8x1xf32>
    %44 = arith.mulf %43, %42 : vector<8x1xf32>
    %45 = arith.addf %39, %44 : vector<8x1xf32>
    %46 = math.log %45 : vector<8x1xf32>
    %47 = arith.addf %37, %46 : vector<8x1xf32>
    %48 = arith.subf %19, %35 : vector<8x1xf32>
    %49 = math.exp %48 : vector<8x1xf32>
    %50 = arith.subf %19, %23 : vector<8x1xf32>
    %51 = arith.mulf %49, %50 : vector<8x1xf32>
    %52 = arith.subf %47, %35 : vector<8x1xf32>
    %53 = arith.addf %51, %52 : vector<8x1xf32>
    %c8_i32 = arith.constant 8 : i32
    %54 = arith.muli %arg0, %c8_i32 : i32
    %55 = tpu.iota {dimensions = array<i32: 0>} : vector<8x1xi32>
    %56 = vector.broadcast %54 : i32 to vector<8x1xi32>
    %57 = arith.addi %56, %55 : vector<8x1xi32>
    %c8_i32_17 = arith.constant 8 : i32
    %58 = vector.broadcast %c8_i32_17 : i32 to vector<8x1xi32>
    %59 = arith.cmpi slt, %57, %58 : vector<8x1xi32>
    %cst_18 = arith.constant 0.000000e+00 : f32
    %60 = vector.broadcast %cst_18 : f32 to vector<8x1xf32>
    %61 = arith.select %59, %53, %60 : vector<8x1xi1>, vector<8x1xf32>
    %62 = vector.shape_cast %61 : vector<8x1xf32> to vector<1x8x1xf32>
    %cst_19 = arith.constant dense<0.000000e+00> : vector<1xf32>
    %63 = vector.multi_reduction <add>, %62, %cst_19 [1, 2] : vector<1x8x1xf32> to vector<1xf32>
    %64 = vector.shape_cast %63 : vector<1xf32> to vector<1x1x1xf32>
    %65 = vector.extract %64[0, 0, 0] : f32 from vector<1x1x1xf32>
    %cst_20 = arith.constant 0.000000e+00 : f32
    %66 = vector.broadcast %cst_20 : f32 to vector<1x128xf32>
    %67 = vector.broadcast %65 : f32 to vector<1x128xf32>
    %68 = arith.addf %66, %67 : vector<1x128xf32>
    %c0_21 = arith.constant 0 : index
    %c0_22 = arith.constant 0 : index
    %69 = vector.load %arg4[%c0_21, %c0_22] : memref<1x128xf32, #tpu.memory_space<vmem>>, vector<1x128xf32>
    tpu.vector_store %arg4[%c0_21, %c0_22], %68 {strides = array<i32>} : memref<1x128xf32, #tpu.memory_space<vmem>>, vector<1x128xf32>,
    return
  }
  func.func @transform_0(%arg0: i32) -> (i32, i32) {
    %c0_i32 = arith.constant 0 : i32
    %c0_i32_0 = arith.constant 0 : i32
    return %arg0, %c0_i32 : i32, i32
  }
  func.func @transform_1(%arg0: i32) -> (i32, i32) {
    %c0_i32 = arith.constant 0 : i32
    %c0_i32_0 = arith.constant 0 : i32
    return %arg0, %c0_i32 : i32, i32
  }
  func.func @transform_2(%arg0: i32) -> (i32, i32) {
    %c0_i32 = arith.constant 0 : i32
    %c0_i32_0 = arith.constant 0 : i32
    return %arg0, %c0_i32 : i32, i32
  }
  func.func @transform_3(%arg0: i32) -> (i32, i32) {
    %c0_i32 = arith.constant 0 : i32
    %c0_i32_0 = arith.constant 0 : i32
    return %c0_i32, %arg0 : i32, i32
  }
}

</mosaic_0001>

<bundles_post_ra>
// kernel: tpu_custom_call.1
= control target key start
LH: loop header
LB: loop body
LE: loop exit
PB: predicated region body
PF: predicated region fallthrough
CT: control target
= control target key end

     0   :  { %8 = vsyncpa [#allocation3], 0  ;;  %s236_s0 = inlined_call_operand.vmem [shape: f32[8,128], index: 0, kind: input, shape index: {}]   ;;  %s237_s1 = inlined_call_operand.hbm [shape: f32[8,128], index: 1, kind: input, shape index: {}]   ;;  %s238_s2 = inlined_call_operand.vmem [shape: s32[8,1], index: 2, kind: input, shape index: {}]   ;;  %s239_s3 = inlined_call_operand.hbm [shape: f32[1,128], index: 3, kind: output, shape index: {}]  }
   0x1   :  { %9 = vsyncpa [#allocation4], 0  ;;  %s183_s12 = smov [#allocation2]   ;;  %s135_s16 = scalar_lea.hbm %s237_s1, 128 }
   0x2   :  { %s18_s13 = sshll.u32 %s183_s12, 4  ;;  %p136_p0 = scmp.ne.s32.totalorder %s237_s1, %s135_s16  ;;  %s19_s13 = int_to_ptr.vmem [resolvable:$true] %s18_s13 }
   0x3   :  { %p139_p1 = scmp.lt.u32.totalorder %s135_s16, %s237_s1 }
   0x5   :  { %p141_p2 = pnand %p139_p1, %p136_p0 }
   0x7   :  { %144 = shalt.err (!%p141_p2)
}
   0x8   :  { %s145_s21 = scalar_lea.vmem %s19_s13, 128  ;;  %p150_p4 = scmp.lt.s32.totalorder %s19_s13, %s19_s13 }
   0x9   :  { %p146_p3 = scmp.ne.s32.totalorder %s19_s13, %s145_s21  ;;  %p151_p5 = scmp.lt.s32.totalorder %s145_s21, %s145_s21 }
   0xb   :  { %p152_p6 = por %p151_p5, %p150_p4 }
   0xd   :  { %p153_p7 = pnand %p152_p6, %p146_p3 }
   0xf   :  { %156 = shalt.err (!%p153_p7)
}
  0x10   :  { %21 = dma.hbm_to_vmem [thread:$0]  %s237_s1, 128, %s19_s13, [#allocation3]  }
  0x11   :  { %179 = dma.done.wait [#allocation3], 128  }
  0x12   :  { %180 = vsyncadd [#allocation3], 4294967168  ;;  %v184_v0 = vmov 0   ;;  %v29_v1 = vld [vmem:[%s238_s2] sm:$0xff]  ;;  %v27_v2 = vlaneseq  ;;  %vm84_vm1 = vcmask 7168  }
  0x13   :  { %120 = vset.pattern.permute.xlu0 %v184_v0  ;;  %v38_v4 = vld [vmem:[%s236_s0] sm:$0xff]  ;;  %s185_s0 = smov [#allocation5]  }
  0x14   :  { %31 = vperm.xlu0 %120, %v29_v1   ;;  %v28_v3 = vand.u32 127, %v27_v2  ;;  %v34_v5 = vld [vmem:[#allocation2] sm:$0xff]  ;;  %s104_s1 = sshll.u32 %s185_s0, 4  ;;  %s105_s1 = int_to_ptr.vmem [resolvable:$true] %s104_s1 }
  0x15   :  { %s157_s28 = scalar_lea.vmem %s105_s1, 16  ;;  %s161_s29 = scalar_lea.vmem %s105_s1, 32 }
  0x16   :  { %p158_p8 = scmp.ne.s32.totalorder %s105_s1, %s157_s28  ;;  %p162_p9 = scmp.lt.s32.totalorder %s105_s1, %s105_s1 }
  0x17   :  { %p163_p10 = scmp.lt.s32.totalorder %s161_s29, %s157_s28 }
  0x19   :  { %p164_p11 = por %p163_p10, %p162_p9 }
  0x1b   :  { %p165_p12 = pnand %p164_p11, %p158_p8 }
  0x93   :  { %v32_v6 = vpop.permute.xlu0 %31 }
  0x94   :  { %vm33_vm0 = vcmp.eq.s32.totalorder %v28_v3, %v32_v6 }
  0x95   :  { %v39_v7 = vsel %vm33_vm0, %v38_v4, 0.0  ;;  %v35_v8 = vsel %vm33_vm0, %v34_v5, 0.0 }
  0x96   :  { %40 = vadd.xlane.f32.xlu1 %v39_v7  ;;  %36 = vadd.xlane.f32.xlu0 %v35_v8 }
 0x123   :  { %v41_v9 = vpop.xlane.xlu1 %40  ;;  %v37_v10 = vpop.xlane.xlu0 %36 }
 0x124   :  { %v44_v11 = vmul.f32 0.25, %v41_v9  ;;  %v42_v12 = vmul.f32 0.25, %v37_v10 }
 0x126   :  { %v114_v13 = vadd.f32 -0.1875, %v44_v11  ;;  %v113_v14 = vadd.f32 -0.125, %v42_v12 }
 0x128   :  { %v58_v15 = vmax.f32 %v114_v13, 0.0  ;;  %v46_v16 = vmax.f32 %v113_v14, 0.0  ;;  %v73_v41 = vsub.f32 %v113_v14, %v114_v13 }
 0x12a   :  { %v50_v17 = vsub.f32 0.0, %v46_v16  ;;  %v47_v18 = vsub.f32 %v113_v14, %v46_v16  ;;  %v62_v19 = vsub.f32 0.0, %v58_v15  ;;  %v59_v23 = vsub.f32 %v114_v13, %v58_v15 }
 0x12c   :  { %v51_v20 = vmul.f32 1.442695, %v50_v17  ;;  %v48_v21 = vmul.f32 1.442695, %v47_v18  ;;  %v63_v22 = vmul.f32 1.442695, %v62_v19 }
 0x12d   :  { %v60_v24 = vmul.f32 1.442695, %v59_v23 }
 0x12e   :  { %121 = vpow2.f32 %v51_v20 }
 0x12f   :  { %123 = vpow2.f32 %v48_v21 }
 0x130   :  { %125 = vpow2.f32 %v63_v22 }
 0x131   :  { %127 = vpow2.f32 %v60_v24 }
 0x138   :  { %v122_v25 = vpop.eup %121 }
 0x139   :  { %v53_v26 = vmul.f32 127.0, %v122_v25  ;;  %v124_v27 = vpop.eup %123 }
 0x13a   :  { %v126_v28 = vpop.eup %125 }
 0x13b   :  { %v54_v29 = vadd.f32 %v124_v27, %v53_v26  ;;  %v65_v30 = vmul.f32 127.0, %v126_v28  ;;  %v128_v31 = vpop.eup %127 }
 0x13d   :  { %129 = vlog2.f32 %v54_v29  ;;  %v66_v32 = vadd.f32 %v128_v31, %v65_v30 }
 0x13f   :  { %131 = vlog2.f32 %v66_v32 }
 0x147   :  { %v130_v33 = vpop.eup %129 }
 0x148   :  { %v56_v34 = vmul.f32 0.6931472, %v130_v33 }
 0x149   :  { %v132_v38 = vpop.eup %131 }
 0x14a   :  { %v57_v35 = vadd.f32 %v56_v34, %v46_v16  ;;  %v68_v39 = vmul.f32 0.6931472, %v132_v38 }
 0x14c   :  { %v70_v36 = vsub.f32 %v113_v14, %v57_v35  ;;  %v69_v40 = vadd.f32 %v68_v39, %v58_v15 }
 0x14e   :  { %v71_v37 = vmul.f32 1.442695, %v70_v36  ;;  %v75_v44 = vsub.f32 %v69_v40, %v57_v35 }
 0x150   :  { %133 = vpow2.f32 %v71_v37 }
 0x15a   :  { %v134_v42 = vpop.eup %133 }
 0x15b   :  { %v74_v43 = vmul.f32 %v134_v42, %v73_v41 }
 0x15d   :  { %v76_v45 = vadd.f32 %v75_v44, %v74_v43 }
 0x15f   :  { %v85_v46 = vsel %vm84_vm1, %v76_v45, 0.0 }
 0x160   :  { %86 = vadd.xlane.f32.xlu1 %v85_v46 }
 0x1ed   :  { %v87_v47 = vpop.xlane.xlu1 %86 }
 0x1ee   :  { %v88_v48 = vrot.slane %v87_v47, 4 }
 0x1f0   :  { %v89_v49 = vadd.f32 %v88_v48, %v87_v47 }
 0x1f2   :  { %v90_v50 = vrot.slane %v89_v49, 2 }
 0x1f4   :  { %v91_v51 = vadd.f32 %v90_v50, %v89_v49 }
 0x1f6   :  { %v92_v52 = vrot.slane %v91_v51, 1 }
 0x1f8   :  { %v93_v53 = vadd.f32 %v92_v52, %v91_v51 }
 0x1fa   :  { %115 = vpush %v93_v53 }
 0x22b   :  { %s116_s2 = spop %115 }
 0x22c   :  { %v95_v54 = vstv %s116_s2 }
 0x22d   :  { %97 = vst [vmem:[#allocation5] sm:$0x1] %v95_v54 }
 0x22e   :  { %168 = shalt.err (!%p165_p12)
}
 0x22f   :  { %s169_s5 = scalar_lea.hbm %s239_s3, 16 }
 0x230   :  { %p170_p13 = scmp.ne.s32.totalorder %s239_s3, %s169_s5  ;;  %p173_p0 = scmp.lt.u32.totalorder %s169_s5, %s239_s3 }
 0x232   :  { %p175_p1 = pnand %p173_p0, %p170_p13 }
 0x234   :  { %178 = shalt.err (!%p175_p1)
}
 0x235   :  { %107 = dma.vmem_to_hbm [thread:$0]  %s105_s1, 16, %s239_s3, [#allocation4]  }
 0x236   :  { %181 = dma.done.wait [#allocation4], 16  }
 0x237   :  { %182 = vsyncadd [#allocation4], 4294967280 }
 0x238   :  { %111 = vsyncpa [#allocation3], 1 }
 0x239   :  { %112 = vsyncpa [#allocation4], 1 }

</bundles_post_ra>
